<compile_context>
chip_gen: v6e
topology: v6e:2x2x1
jax: 0.10.0
libtpu: 0.0.40
codegen_flags: <defaults>
</compile_context>

<pallas_src>
import functools

import jax
import jax.numpy as jnp
from jax import lax
from jax.experimental import pallas as pl
from jax.experimental.pallas import tpu as pltpu


_TM_TARGET = 4096  # large tile (step overhead amortized) yet safe for v5e scoped VMEM


# ----------------------------------------------------------------------------
# Fused kernel: conv GEMM + bias + ReLU + global-avg-pool + both FC heads
# ----------------------------------------------------------------------------
def _make_kernel(bb, tm, hw):
    """bb = images per batch block, tm = rows per tile, hw = H*W."""
    inv_hw = 1.0 / float(hw)

    def kernel(
        patches_ref,   # [tm, 9*Cin] bf16 im2col rows (shared: saliency == x)
        wconv_ref,     # [9*Cin, Ctot] bf16, classifier|detector kernels packed on N
        bconv_ref,     # [1, Ctot] f32
        wfc_ref,       # [Ctot, Dtot] f32 block-diagonal (clf head | det head)
        bfc_ref,       # [1, Dtot] f32
        out_ref,       # [bb, Dtot] (leading batch-block dim squeezed)
        pooled_acc,    # VMEM scratch [bb, Ctot]: running pooled features
    ):
        j = pl.program_id(1)

        @pl.when(j == 0)
        def _init():
            pooled_acc[...] = jnp.zeros_like(pooled_acc)

        # conv-as-GEMM for this tile; feature map stays on-chip (never hits HBM).
        feat = jnp.dot(patches_ref[...], wconv_ref[...],
                       preferred_element_type=jnp.float32)
        feat = jnp.maximum(feat + bconv_ref[...], 0.0)

        if bb == 1:
            # Tile is a chunk of ONE image: cheap column reduce, no pool matrix.
            pooled_acc[...] += jnp.sum(feat, axis=0, keepdims=True) * inv_hw
        else:
            # Tile is exactly bb whole images (steps == 1, asserted in wrapper):
            # build the one-hot pooling tile in-kernel (no HBM traffic, no div).
            row = lax.broadcasted_iota(jnp.int32, (bb, tm), 0)
            col = lax.broadcasted_iota(jnp.int32, (bb, tm), 1)
            pool = jnp.where((col >= row * hw) & (col < (row + 1) * hw),
                             jnp.float32(inv_hw), jnp.float32(0.0))
            pooled_acc[...] += jnp.dot(pool, feat,
                                       preferred_element_type=jnp.float32)

        @pl.when(j == pl.num_programs(1) - 1)
        def _finalize():
            # Block-diagonal FC applies both heads in one GEMM.
            out_ref[...] = (
                jnp.dot(pooled_acc[...], wfc_ref[...],
                        preferred_element_type=jnp.float32)
                + bfc_ref[...]
            )

    return kernel


def _largest_divisor_leq(n, cap):
    cap = max(1, min(cap, n))
    for d in range(cap, 0, -1):
        if n % d == 0:
            return d
    return 1


# ----------------------------------------------------------------------------
# Forward (interpret_method == 'Data')
# ----------------------------------------------------------------------------
def detector_interpreter_forward(x_nchw, wconv, bconv, wfc, bfc, *, num_classes):
    """Returns (detector_output, classifier_output)."""
    # NCHW (torch) -> NHWC
    x = jnp.transpose(x_nchw, (0, 2, 3, 1)).astype(jnp.float32)
    B, H, W, Cin = x.shape
    hw = H * W
    M = B * hw
    K = 9 * Cin
    Ctot = wconv.shape[1]
    Dtot = wfc.shape[1]

    # 'Data' branch: saliency_images = x  ->  classifier and detector see the
    # SAME tensor, so the im2col patches are built once and fed to one kernel.
    # bf16 cast halves the dominant HBM stream (f32 accumulation stays inside).
    xp = jnp.pad(x, ((0, 0), (1, 1), (1, 1), (0, 0)))
    patches = jnp.concatenate(
        [xp[:, dy:dy + H, dx:dx + W, :] for dy in range(3) for dx in range(3)],
        axis=-1,
    ).reshape(M, K).astype(jnp.bfloat16)
    # TODO(synk): at production H/W, fuse im2col into the kernel (ANY-space x +
    # nine shifted static slices per tile) to remove the 9x read amplification.

    # ----- tiling -------------------------------------------------------------
    # Either bb == 1 (tile is a divisor-of-H*W chunk of a single image) or
    # steps == 1 (tile is exactly bb whole images); the kernel relies on this.
    if hw >= _TM_TARGET:
        bb = 1
        tm = _largest_divisor_leq(hw, _TM_TARGET)
    else:
        r_cap = max(1, _TM_TARGET // hw)
        if B >= 2:
            # keep >= 2 batch blocks so v7x megacore can split the parallel axis
            r_cap = min(r_cap, max(1, B // 2))
        bb = _largest_divisor_leq(B, r_cap)
        tm = bb * hw
    steps = (bb * hw) // tm
    assert bb == 1 or steps == 1
    grid = (B // bb, steps)

    kernel = _make_kernel(bb, tm, hw)

    out = pl.pallas_call(
        kernel,
        out_shape=jax.ShapeDtypeStruct((B // bb, bb, Dtot), jnp.float32),
        grid=grid,
        in_specs=[
            pl.BlockSpec((tm, K), lambda i, j: (i * steps + j, 0)),   # patches
            pl.BlockSpec((K, Ctot), lambda i, j: (0, 0)),             # conv weights
            pl.BlockSpec((1, Ctot), lambda i, j: (0, 0)),             # conv bias
            pl.BlockSpec((Ctot, Dtot), lambda i, j: (0, 0)),          # block-diag FC
            pl.BlockSpec((1, Dtot), lambda i, j: (0, 0)),             # FC bias
        ],
        out_specs=pl.BlockSpec((pl.Squeezed(), bb, Dtot), lambda i, j: (i, 0, 0)),
        scratch_shapes=[pltpu.VMEM((bb, Ctot), jnp.float32)],
        # batch blocks are independent ("parallel", v7x 2-TC); the spatial
        # reduction axis carries the pooled accumulator ("arbitrary").
        compiler_params=pltpu.CompilerParams(
            dimension_semantics=("parallel", "arbitrary")),
    )(patches, wconv, bconv, wfc, bfc)

    out = out.reshape(B, Dtot)
    classifier_output = out[:, :num_classes]
    detector_output = out[:, num_classes:]
    # TODO(synk): non-'Data' interpret methods need classifier input-gradient
    # saliency (backprop through classifier); only the 'Data' path is implemented.
    return detector_output, classifier_output


# ----------------------------------------------------------------------------
# Parameter construction / packing (done once, outside the jitted forward)
# ----------------------------------------------------------------------------
def make_params(key, cin, cout, num_out):
    k1, k2, k3, k4 = jax.random.split(key, 4)
    conv_w = jax.random.normal(k1, (3, 3, cin, cout), jnp.float32) * 0.1
    conv_b = jax.random.normal(k2, (cout,), jnp.float32) * 0.01
    fc_w = jax.random.normal(k3, (cout, num_out), jnp.float32) * 0.1
    fc_b = jax.random.normal(k4, (num_out,), jnp.float32) * 0.01
    return conv_w, conv_b, fc_w, fc_b


def pack_params(classifier_params, detector_params):
    cw_c, cb_c, fw_c, fb_c = classifier_params
    cw_d, cb_d, fw_d, fb_d = detector_params
    cin = cw_c.shape[2]
    co_c, co_d = cw_c.shape[3], cw_d.shape[3]
    dc, dd = fw_c.shape[1], fw_d.shape[1]

    # Conv kernels packed along N; (dy, dx, cin) flattening matches the im2col
    # patch layout built in the wrapper.  bf16 to match the patches stream.
    wconv = jnp.concatenate(
        [cw_c.reshape(9 * cin, co_c), cw_d.reshape(9 * cin, co_d)],
        axis=1).astype(jnp.bfloat16)
    bconv = jnp.concatenate([cb_c, cb_d]).reshape(1, co_c + co_d).astype(jnp.float32)

    # Block-diagonal FC: classifier rows/cols first, detector rows/cols second.
    wfc = jnp.zeros((co_c + co_d, dc + dd), jnp.float32)
    wfc = wfc.at[:co_c, :dc].set(fw_c)
    wfc = wfc.at[co_c:, dc:].set(fw_d)
    bfc = jnp.concatenate([fb_c, fb_d]).reshape(1, dc + dd)
    return wconv, bconv, wfc, bfc


# ----------------------------------------------------------------------------
# Pure-JAX reference (one network, f32) for correctness checking
# ----------------------------------------------------------------------------
def _reference_net(x_nhwc, params):
    conv_w, conv_b, fc_w, fc_b = params
    B, H, W, Cin = x_nhwc.shape
    xp = jnp.pad(x_nhwc, ((0, 0), (1, 1), (1, 1), (0, 0)))
    patches = jnp.concatenate(
        [xp[:, dy:dy + H, dx:dx + W, :] for dy in range(3) for dx in range(3)],
        axis=-1,
    ).reshape(B * H * W, 9 * Cin)
    feat = jnp.maximum(patches @ conv_w.reshape(9 * Cin, -1) + conv_b, 0.0)
    pooled = feat.reshape(B, H * W, -1).mean(axis=1)
    return pooled @ fc_w + fc_b


if __name__ == "__main__":
    B, C, Hdim, Wdim = 2, 4, 16, 16
    NUM_CLASSES, NUM_DET = 10, 2

    root = jax.random.PRNGKey(0)
    kx, kc, kd = jax.random.split(root, 3)

    x = jax.random.normal(kx, (B, C, Hdim, Wdim), jnp.float32)  # NCHW input
    classifier_params = make_params(kc, C, 8, NUM_CLASSES)
    detector_params = make_params(kd, C, 8, NUM_DET)

    wconv, bconv, wfc, bfc = pack_params(classifier_params, detector_params)

    fwd = jax.jit(functools.partial(
        detector_interpreter_forward, num_classes=NUM_CLASSES))
    det_out, clf_out = fwd(x, wconv, bconv, wfc, bfc)
    jax.block_until_ready((det_out, clf_out))

    assert det_out.shape == (B, NUM_DET)
    assert clf_out.shape == (B, NUM_CLASSES)

    # Correctness vs pure-JAX f32 reference (bf16 inputs -> 1e-2 tolerance).
    x_nhwc = jnp.transpose(x, (0, 2, 3, 1)).astype(jnp.float32)
    clf_ref = _reference_net(x_nhwc, classifier_params)
    det_ref = _reference_net(x_nhwc, detector_params)
    assert jnp.allclose(clf_out, clf_ref, atol=1e-2, rtol=1e-2), \
        float(jnp.max(jnp.abs(clf_out - clf_ref)))
    assert jnp.allclose(det_out, det_ref, atol=1e-2, rtol=1e-2), \
        float(jnp.max(jnp.abs(det_out - det_ref)))

    print("KERNEL_OK")
</pallas_src>

<mosaic_0001>
module attributes {stable_mosaic.version = 11 : i64} {
  func.func @kernel(%arg0: i32, %arg1: i32, %arg2: memref<256x36xbf16, #tpu.memory_space<vmem>>, %arg3: memref<36x16xbf16, #tpu.memory_space<vmem>>, %arg4: memref<1x16xf32, #tpu.memory_space<vmem>>, %arg5: memref<16x12xf32, #tpu.memory_space<vmem>>, %arg6: memref<1x12xf32, #tpu.memory_space<vmem>>, %arg7: memref<1x1x12xf32, #tpu.memory_space<vmem>>, %arg8: memref<1x16xf32, #tpu.memory_space<vmem>>) attributes {dimension_semantics = [#tpu.dimension_semantics<parallel>, #tpu.dimension_semantics<arbitrary>], iteration_bounds = array<i64: 2, 1>, scalar_prefetch = 0 : i64, scratch_operands = 1 : i64, tpu.core_type = #tpu.core_type<tc>, window_params = [{transform_indices = @transform_0, window_bounds = array<i64: 256, 36>}, {pipeline_mode = #tpu.pipeline_mode<synchronous>, transform_indices = @transform_1, window_bounds = array<i64: 36, 16>}, {pipeline_mode = #tpu.pipeline_mode<synchronous>, transform_indices = @transform_2, window_bounds = array<i64: 1, 16>}, {pipeline_mode = #tpu.pipeline_mode<synchronous>, transform_indices = @transform_3, window_bounds = array<i64: 16, 12>}, {pipeline_mode = #tpu.pipeline_mode<synchronous>, transform_indices = @transform_4, window_bounds = array<i64: 1, 12>}, {transform_indices = @transform_5, window_bounds = array<i64: 1, 1, 12>}]} {
    %c0_i32 = arith.constant 0 : i32
    %0 = arith.cmpi eq, %arg1, %c0_i32 : i32
    %1 = arith.extui %0 : i1 to i32
    %c0_i32_0 = arith.constant 0 : i32
    %2 = arith.cmpi ne, %1, %c0_i32_0 : i32
    scf.if %2 {
      %cst_15 = arith.constant 0.000000e+00 : f32
      %21 = vector.broadcast %cst_15 : f32 to vector<1x16xf32>
      %c0_16 = arith.constant 0 : index
      %c0_17 = arith.constant 0 : index
      %22 = vector.load %arg8[%c0_16, %c0_17] : memref<1x16xf32, #tpu.memory_space<vmem>>, vector<1x16xf32>
      tpu.vector_store %arg8[%c0_16, %c0_17], %21 {strides = array<i32>} : memref<1x16xf32, #tpu.memory_space<vmem>>, vector<1x16xf32>,
    } else {
    }
    %c0 = arith.constant 0 : index
    %c0_1 = arith.constant 0 : index
    %3 = vector.load %arg2[%c0, %c0_1] : memref<256x36xbf16, #tpu.memory_space<vmem>>, vector<256x36xbf16>
    %c0_2 = arith.constant 0 : index
    %c0_3 = arith.constant 0 : index
    %4 = vector.load %arg3[%c0_2, %c0_3] : memref<36x16xbf16, #tpu.memory_space<vmem>>, vector<36x16xbf16>
    %cst = arith.constant dense<0.000000e+00> : vector<256x16xf32>
    %5 = tpu.matmul %3, %4, %cst {dimension_numbers = #tpu.dot_dimension_numbers<[1], [0], [0], [1], [0, 0, 1, 1], [], []>} : vector<256x36xbf16>, vector<36x16xbf16>, vector<256x16xf32> -> vector<256x16xf32>
    %c0_4 = arith.constant 0 : index
    %c0_5 = arith.constant 0 : index
    %6 = vector.load %arg4[%c0_4, %c0_5] : memref<1x16xf32, #tpu.memory_space<vmem>>, vector<1x16xf32>
    %7 = vector.broadcast %6 : vector<1x16xf32> to vector<256x16xf32>
    %8 = arith.addf %5, %7 : vector<256x16xf32>
    %cst_6 = arith.constant 0.000000e+00 : f32
    %9 = vector.broadcast %cst_6 : f32 to vector<256x16xf32>
    %10 = arith.maximumf %8, %9 : vector<256x16xf32>
    %c0_7 = arith.constant 0 : index
    %c0_8 = arith.constant 0 : index
    %11 = vector.load %arg8[%c0_7, %c0_8] : memref<1x16xf32, #tpu.memory_space<vmem>>, vector<1x16xf32>
    %cst_9 = arith.constant dense<0.000000e+00> : vector<16xf32>
    %12 = vector.multi_reduction <add>, %10, %cst_9 [0] : vector<256x16xf32> to vector<16xf32>
    %13 = vector.shape_cast %12 : vector<16xf32> to vector<1x16xf32>
    %cst_10 = arith.constant 3.906250e-03 : f32
    %14 = vector.broadcast %cst_10 : f32 to vector<1x16xf32>
    %15 = arith.mulf %13, %14 : vector<1x16xf32>
    %16 = arith.addf %11, %15 : vector<1x16xf32>
    %c0_11 = arith.constant 0 : index
    %c0_12 = arith.constant 0 : index
    %17 = vector.load %arg8[%c0_11, %c0_12] : memref<1x16xf32, #tpu.memory_space<vmem>>, vector<1x16xf32>
    tpu.vector_store %arg8[%c0_11, %c0_12], %16 {strides = array<i32>} : memref<1x16xf32, #tpu.memory_space<vmem>>, vector<1x16xf32>,
    %c0_i32_13 = arith.constant 0 : i32
    %18 = arith.cmpi eq, %arg1, %c0_i32_13 : i32
    %19 = arith.extui %18 : i1 to i32
    %c0_i32_14 = arith.constant 0 : i32
    %20 = arith.cmpi ne, %19, %c0_i32_14 : i32
    scf.if %20 {
      %c0_15 = arith.constant 0 : index
      %c0_16 = arith.constant 0 : index
      %21 = vector.load %arg8[%c0_15, %c0_16] : memref<1x16xf32, #tpu.memory_space<vmem>>, vector<1x16xf32>
      %c0_17 = arith.constant 0 : index
      %c0_18 = arith.constant 0 : index
      %22 = vector.load %arg5[%c0_17, %c0_18] : memref<16x12xf32, #tpu.memory_space<vmem>>, vector<16x12xf32>
      %cst_19 = arith.constant dense<0.000000e+00> : vector<1x12xf32>
      %23 = tpu.matmul %21, %22, %cst_19 {dimension_numbers = #tpu.dot_dimension_numbers<[1], [0], [0], [1], [0, 0, 1, 1], [], []>} : vector<1x16xf32>, vector<16x12xf32>, vector<1x12xf32> -> vector<1x12xf32>
      %c0_20 = arith.constant 0 : index
      %c0_21 = arith.constant 0 : index
      %24 = vector.load %arg6[%c0_20, %c0_21] : memref<1x12xf32, #tpu.memory_space<vmem>>, vector<1x12xf32>
      %25 = arith.addf %23, %24 : vector<1x12xf32>
      %c0_22 = arith.constant 0 : index
      %c0_23 = arith.constant 0 : index
      %c0_24 = arith.constant 0 : index
      %26 = vector.load %arg7[%c0_22, %c0_23, %c0_24] : memref<1x1x12xf32, #tpu.memory_space<vmem>>, vector<1x1x12xf32>
      %27 = vector.shape_cast %26 : vector<1x1x12xf32> to vector<1x12xf32>
      %28 = vector.shape_cast %25 : vector<1x12xf32> to vector<1x1x12xf32>
      tpu.vector_store %arg7[%c0_22, %c0_23, %c0_24], %28 {strides = array<i32>} : memref<1x1x12xf32, #tpu.memory_space<vmem>>, vector<1x1x12xf32>,
    } else {
    }
    return
  }
  func.func @transform_0(%arg0: i32, %arg1: i32) -> (i32, i32) {
    %c1_i32 = arith.constant 1 : i32
    %0 = arith.muli %arg0, %c1_i32 : i32
    %1 = arith.addi %0, %arg1 : i32
    %c0_i32 = arith.constant 0 : i32
    %c0_i32_0 = arith.constant 0 : i32
    return %1, %c0_i32 : i32, i32
  }
  func.func @transform_1(%arg0: i32, %arg1: i32) -> (i32, i32) {
    %c0_i32 = arith.constant 0 : i32
    %c0_i32_0 = arith.constant 0 : i32
    %c0_i32_1 = arith.constant 0 : i32
    return %c0_i32, %c0_i32_0 : i32, i32
  }
  func.func @transform_2(%arg0: i32, %arg1: i32) -> (i32, i32) {
    %c0_i32 = arith.constant 0 : i32
    %c0_i32_0 = arith.constant 0 : i32
    %c0_i32_1 = arith.constant 0 : i32
    return %c0_i32, %c0_i32_0 : i32, i32
  }
  func.func @transform_3(%arg0: i32, %arg1: i32) -> (i32, i32) {
    %c0_i32 = arith.constant 0 : i32
    %c0_i32_0 = arith.constant 0 : i32
    %c0_i32_1 = arith.constant 0 : i32
    return %c0_i32, %c0_i32_0 : i32, i32
  }
  func.func @transform_4(%arg0: i32, %arg1: i32) -> (i32, i32) {
    %c0_i32 = arith.constant 0 : i32
    %c0_i32_0 = arith.constant 0 : i32
    %c0_i32_1 = arith.constant 0 : i32
    return %c0_i32, %c0_i32_0 : i32, i32
  }
  func.func @transform_5(%arg0: i32, %arg1: i32) -> (i32, i32, i32) {
    %c0_i32 = arith.constant 0 : i32
    %c0_i32_0 = arith.constant 0 : i32
    %c0_i32_1 = arith.constant 0 : i32
    return %arg0, %c0_i32, %c0_i32_0 : i32, i32, i32
  }
}

</mosaic_0001>

<bundles_post_ra>
// kernel: detector_interpreter_forward.1
= control target key start
LH: loop header
LB: loop body
LE: loop exit
PB: predicated region body
PF: predicated region fallthrough
CT: control target
= control target key end

     0   :  { %s1068_s18 = smov 0   ;;  %s1070_s19 = smov 0   ;;  %s1239_s0 = inlined_call_operand.vmem [shape: bf16[512,36], index: 0, kind: input, shape index: {}]   ;;  %s1240_s1 = inlined_call_operand.vmem [shape: bf16[36,16], index: 1, kind: input, shape index: {}]   ;;  %s1241_s2 = inlined_call_operand.vmem [shape: f32[1,16], index: 2, kind: input, shape index: {}]   ;;  %s1242_s3 = inlined_call_operand.vmem [shape: f32[16,12], index: 3, kind: input, shape index: {}]   ;;  %s1243_s4 = inlined_call_operand.vmem [shape: f32[1,12], index: 4, kind: input, shape index: {}]   ;;  %s1244_s5 = inlined_call_operand.vmem [shape: f32[2,1,12], index: 5, kind: output, shape index: {}]  }
   0x1   :  { %s1072_s20 = smov 0  }
   0x2 LB: > { %s27_s21 = sadd.s32 1, %s1030_s19  ;;  %p850_p0 = scmp.ge.s32.totalorder %s1034_s20, 1  ;;  %s1034_s20 = sphi %s1072_s20, %s15_s20   ;;  %s1030_s19 = sphi %s1070_s19, %s1246_s19   ;;  %s1026_s18 = sphi %s1068_s18, %s1245_s18  }
   0x3   : > { %p29_p1 = scmp.ge.s32.totalorder %s27_s21, 2  ;;  %p204_p2 = scmp.lt.s32.totalorder %s1034_s20, 3 }
   0x5   : > { %s1248_s21 = smov (%p29_p1, %s27_s21), 0  ;;  %p205_p3 = pnand %p850_p0, %p204_p2 }
   0x6   : > { %s851_s26 = sshll.u32 (!%p205_p3), %s1026_s18, 5  ;;  %p239_p5 = scmp.lt.s32.totalorder (!%p205_p3), %s1026_s18, 1 }
   0x7   : > { %208 = sbr.rel (%p205_p3) target bundleno = 511 (0x1ff), region = 40  ;;  %p233_p4 = scmp.lt.s32.totalorder (!%p205_p3), %s851_s26, 63 }
   0xc   : > { %v993_v0 = vld [vmem:[%s1240_s1 + $0x10] ss:$0 sps:$4 sm:$0x33]   ;;  %vm437_vm0 = vcmask 1041408   ;;  %v994_v1 = vld [vmem:[%s1240_s1 + $0x8] sm:$0xff]   ;;  %v995_v3 = vld [vmem:[%s1240_s1] sm:$0xff]  }
   0xd   : > { %965 = vmatprep.subr.msk.bf16.mxu0 %vm437_vm0, %v993_v0  ;;  %v439_v2 = vsel %vm437_vm0, %v993_v0, 0  ;;  %966 = vmatprep.subr.msk.bf16.mxu1 %vm437_vm0, %v993_v0  ;;  %s1250_s26 = smov (!%p233_p4, %s851_s26), 63  ;;  %vm388_vm1 = vcmask 293888   ;;  %vm247_vm2 = vcmask 122880   ;;  %v1036_v20 = vmov 0.0   ;;  %v714_v21 = vld [vmem:[%s1242_s3 + $0x8] sm:$0xff] }
   0xe   : > { %915 = vmatpush3.bf16.msra.mxu0 %v439_v2  ;;  %962 = vmatpush3.bf16.msra.mxu1 %v439_v2  ;;  %s852_s29 = sshll.u32 %s1250_s26, 2  ;;  %248 = vst.msk [vmem:[#allocation2] sm:$0x1] %vm247_vm2, %v1036_v20  ;;  %v713_v22 = vld [vmem:[%s1242_s3] sm:$0xff]  ;;  %vm1037_vm3 = vmmov 0   ;;  %vm635_vm4 = vcmask 130048  }
   0xf   : > { %916 = vmatprep.subr.bf16.mxu0 %v994_v1  ;;  %960 = vmatprep.subr.bf16.mxu1 %v994_v1  ;;  %s1101_s7 = scalar_lea.vmem %s1239_s0, %s852_s29  ;;  %v1145_v24 = vld [vmem:[%s1241_s2] ss:$0 sm:$0xff]  ;;  %s1252_s18 = smov (!%p239_p5, %s1026_s18), 1  ;;  %vm789_vm5 = vcmask 90112  }
  0x10   : > { %v996_v4 = vld [vmem:[%s1101_s7] sm:$0xff]   ;;  %v997_v5 = vld [vmem:[%s1101_s7 + $0x8] sm:$0xff]   ;;  %v998_v6 = vld [vmem:[%s1101_s7 + $0x10] sm:$0xff]   ;;  %s241_s22 = scalar_lea.vmem %s1244_s5, %s1252_s18 }
  0x11   : > { %920 = vmatprep.mubr.msk.bf16.mxu0 %vm388_vm1, %v996_v4  ;;  %v999_v7 = vld [vmem:[%s1101_s7 + $0x18] sm:$0xff]   ;;  %v1000_v8 = vld [vmem:[%s1101_s7 + $0x20] sm:$0xff]   ;;  %v1006_v9 = vld [vmem:[%s1101_s7 + $0x50] sm:$0xff]  }
  0x12   : > { %917 = vmatpush3.bf16.msra.mxu0 %v994_v1  ;;  %963 = vmatpush3.bf16.msra.mxu1 %v994_v1  ;;  %v1007_v10 = vld [vmem:[%s1101_s7 + $0x58] sm:$0xff]   ;;  %v1008_v11 = vld [vmem:[%s1101_s7 + $0x60] sm:$0xff]   ;;  %v1001_v12 = vld [vmem:[%s1101_s7 + $0x28] sm:$0xff]  }
  0x13   : > { %918 = vmatprep.subr.bf16.mxu0 %v995_v3  ;;  %961 = vmatprep.subr.bf16.mxu1 %v995_v3  ;;  %v1009_v13 = vld [vmem:[%s1101_s7 + $0x68] sm:$0xff]   ;;  %v1002_v14 = vld [vmem:[%s1101_s7 + $0x30] sm:$0xff]   ;;  %v1003_v16 = vld [vmem:[%s1101_s7 + $0x38] sm:$0xff]  }
  0x14   : > { %940 = vmatprep.mubr.msk.bf16.mxu1 %vm388_vm1, %v1006_v9  ;;  %v1010_v15 = vld [vmem:[%s1101_s7 + $0x70] sm:$0xff]   ;;  %v1011_v17 = vld [vmem:[%s1101_s7 + $0x78] sm:$0xff]   ;;  %v1004_v18 = vld [vmem:[%s1101_s7 + $0x40] sm:$0xff]  }
  0x15   : > { %v1005_v19 = vld [vmem:[%s1101_s7 + $0x48] sm:$0xff]  }
  0x16   : > { %919 = vmatpush3.bf16.msra.mxu0 %v995_v3  ;;  %964 = vmatpush3.bf16.msra.mxu1 %v995_v3 }
  0x17   : > { %952 = vmatprep.subr.mxu1 %v1036_v20 }
  0x19   : > { %921 = vmatmul.mubr.msk.bf16.vlgmr.msra.gmra.mxu0 %vm388_vm1, %v997_v5  ;;  %941 = vmatmul.mubr.msk.bf16.vlgmr.msra.gmra.mxu1 %vm388_vm1, %v1007_v10 }
  0x1a   : > { %924 = vmatprep.mubr.msk.bf16.mxu0 %vm388_vm1, %v998_v6  ;;  %944 = vmatprep.mubr.msk.bf16.mxu1 %vm388_vm1, %v1008_v11 }
  0x1b   : > { %953 = vmatpush3.msra.mxu1 %v714_v21 }
  0x1c   : > { %954 = vmatprep.subr.mxu1 %v1036_v20 }
  0x1d   : > { %955 = vmatpush3.msra.mxu1 %v713_v22 }
  0x21   : > { %925 = vmatmul.mubr.msk.bf16.gmra.mxu0 %vm388_vm1, %v999_v7  ;;  %945 = vmatmul.mubr.msk.bf16.gmra.mxu1 %vm388_vm1, %v1009_v13 }
  0x22   : > { %928 = vmatprep.mubr.msk.bf16.mxu0 %vm388_vm1, %v1000_v8  ;;  %948 = vmatprep.mubr.msk.bf16.mxu1 %vm388_vm1, %v1010_v15 }
  0x29   : > { %929 = vmatmul.mubr.msk.bf16.gmra.mxu0 %vm388_vm1, %v1001_v12  ;;  %949 = vmatmul.mubr.msk.bf16.gmra.mxu1 %vm388_vm1, %v1011_v17 }
  0x2a   : > { %932 = vmatprep.mubr.msk.bf16.mxu0 %vm388_vm1, %v1002_v14  ;;  %956 = vmatprep.mubr.msk.f32.mxu1 %vm1037_vm3, %v1036_v20 }
  0x31   : > { %933 = vmatmul.mubr.msk.bf16.gmra.mxu0 %vm388_vm1, %v1003_v16 }
  0x32   : > { %936 = vmatprep.mubr.msk.bf16.mxu0 %vm388_vm1, %v1004_v18 }
  0x39   : > { %937 = vmatmul.mubr.msk.bf16.gmra.mxu0 %vm388_vm1, %v1005_v19 }
  0xd9   : > { %v922_v23 = vpop.f32.mrf.mxu0  ;;  %v1154_v43 = vpop.f32.mrf.mxu1 }
  0xda   : > { %v484_v28 = vadd.f32 %v922_v23, %v1145_v24 }
  0xdb   : > { %v475_v25 = vpop.f32.mrf.mxu0  ;;  %v1161_v54 = vpop.f32.mrf.mxu1 }
  0xdc   : > { %v476_v26 = vadd.f32 %v1145_v24, %v475_v25  ;;  %v604_v34 = vmax.f32 %v484_v28, 0.0 }
  0xdd   : > { %v923_v27 = vpop.f32.mrf.mxu0  ;;  %v1166_v1 = vpop.f32.mrf.mxu1 }
  0xde   : > { %v602_v30 = vmax.f32 %v476_v26, 0.0  ;;  %v487_v31 = vadd.f32 %v923_v27, %v1145_v24  ;;  %v639_v44 = vsel %vm635_vm4, %v604_v34, 0.0 }
  0xdf   : > { %v478_v29 = vpop.f32.mrf.mxu0  ;;  %v558_v12 = vpop.f32.mrf.mxu1 }
  0xe0   : > { %v479_v32 = vadd.f32 %v1145_v24, %v478_v29  ;;  %v636_v37 = vsel %vm635_vm4, %v602_v30, 0.0  ;;  %v605_v38 = vmax.f32 %v487_v31, 0.0 }
  0xe1   : > { %v926_v33 = vpop.f32.mrf.mxu0  ;;  %v946_v23 = vpop.f32.mrf.mxu1 }
  0xe2   : > { %v603_v35 = vmax.f32 %v479_v32, 0.0  ;;  %v500_v45 = vadd.f32 %v926_v33, %v1145_v24  ;;  %v641_v49 = vsel %vm635_vm4, %v605_v38, 0.0 }
  0xe3   : > { %v491_v36 = vpop.f32.mrf.mxu0 }
  0xe4   : > { %v637_v39 = vsel %vm635_vm4, %v603_v35, 0.0  ;;  %v492_v40 = vadd.f32 %v1145_v24, %v491_v36  ;;  %v608_v55 = vmax.f32 %v500_v45, 0.0  ;;  %v571_v35 = vpop.f32.mrf.mxu1 }
  0xe5   : > { %v638_v41 = vadd.f32 %v637_v39, %v636_v37  ;;  %v927_v42 = vpop.f32.mrf.mxu0 }
  0xe6   : > { %v606_v46 = vmax.f32 %v492_v40, 0.0  ;;  %v503_v50 = vadd.f32 %v927_v42, %v1145_v24  ;;  %v647_v2 = vsel %vm635_vm4, %v608_v55, 0.0 }
  0xe7   : > { %v640_v47 = vadd.f32 %v639_v44, %v638_v41  ;;  %v494_v48 = vpop.f32.mrf.mxu0 }
  0xe8   : > { %v495_v51 = vadd.f32 %v1145_v24, %v494_v48  ;;  %v643_v56 = vsel %vm635_vm4, %v606_v46, 0.0  ;;  %v609_v60 = vmax.f32 %v503_v50, 0.0 }
  0xe9   : > { %v642_v52 = vadd.f32 %v641_v49, %v640_v47  ;;  %v930_v53 = vpop.f32.mrf.mxu0  ;;  %v947_v47 = vpop.f32.mrf.mxu1 }
  0xea   : > { %v607_v57 = vmax.f32 %v495_v51, 0.0  ;;  %v516_v3 = vadd.f32 %v930_v53, %v1145_v24  ;;  %v649_v7 = vsel %vm635_vm4, %v609_v60, 0.0 }
  0xeb   : > { %v644_v58 = vadd.f32 %v643_v56, %v642_v52  ;;  %v507_v59 = vpop.f32.mrf.mxu0 }
  0xec   : > { %v645_v61 = vsel %vm635_vm4, %v607_v57, 0.0  ;;  %v508_v62 = vadd.f32 %v1145_v24, %v507_v59  ;;  %v612_v13 = vmax.f32 %v516_v3, 0.0  ;;  %v559_v3 = vadd.f32 %v1145_v24, %v558_v12 }
  0xed   : > { %v646_v63 = vadd.f32 %v645_v61, %v644_v58  ;;  %v931_v0 = vpop.f32.mrf.mxu0  ;;  %v574_v58 = vpop.f32.mrf.mxu1  ;;  %v556_v61 = vadd.f32 %v1145_v24, %v1161_v54  ;;  %v567_v54 = vadd.f32 %v1166_v1, %v1145_v24  ;;  %v580_v1 = vadd.f32 %v946_v23, %v1145_v24 }
  0xee   : > { %v610_v4 = vmax.f32 %v508_v62, 0.0  ;;  %v519_v8 = vadd.f32 %v931_v0, %v1145_v24  ;;  %v655_v25 = vsel %vm635_vm4, %v612_v13, 0.0 }
  0xef   : > { %v648_v5 = vadd.f32 %v647_v2, %v646_v63  ;;  %v510_v6 = vpop.f32.mrf.mxu0 }
  0xf0   : > { %v511_v9 = vadd.f32 %v1145_v24, %v510_v6  ;;  %v651_v14 = vsel %vm635_vm4, %v610_v4, 0.0  ;;  %v613_v18 = vmax.f32 %v519_v8, 0.0  ;;  %v622_v8 = vmax.f32 %v556_v61, 0.0 }
  0xf1   : > { %v650_v10 = vadd.f32 %v649_v7, %v648_v5  ;;  %v934_v11 = vpop.f32.mrf.mxu0  ;;  %v950_v5 = vpop.f32.mrf.mxu1  ;;  %v564_v7 = vadd.f32 %v1154_v43, %v1145_v24  ;;  %v575_v43 = vadd.f32 %v1145_v24, %v574_v58 }
  0xf2   : > { %v611_v15 = vmax.f32 %v511_v9, 0.0  ;;  %v532_v26 = vadd.f32 %v934_v11, %v1145_v24  ;;  %v657_v30 = vsel %vm635_vm4, %v613_v18, 0.0  ;;  %v623_v11 = vmax.f32 %v559_v3, 0.0 }
  0xf3   : > { %v652_v16 = vadd.f32 %v651_v14, %v650_v10  ;;  %v523_v17 = vpop.f32.mrf.mxu0  ;;  %v587_v14 = vpop.f32.mrf.mxu1  ;;  %v675_v12 = vsel %vm635_vm4, %v622_v8, 0.0  ;;  %v625_v18 = vmax.f32 %v567_v54, 0.0 }
  0xf4   : > { %v653_v19 = vsel %vm635_vm4, %v611_v15, 0.0  ;;  %v524_v20 = vadd.f32 %v1145_v24, %v523_v17  ;;  %v616_v36 = vmax.f32 %v532_v26, 0.0  ;;  %v624_v15 = vmax.f32 %v564_v7, 0.0 }
  0xf5   : > { %v654_v21 = vadd.f32 %v653_v19, %v652_v16  ;;  %v935_v22 = vpop.f32.mrf.mxu0  ;;  %v572_v16 = vadd.f32 %v1145_v24, %v571_v35  ;;  %v677_v19 = vsel %vm635_vm4, %v623_v11, 0.0 }
  0xf6   : > { %v614_v27 = vmax.f32 %v524_v20, 0.0  ;;  %v535_v31 = vadd.f32 %v935_v22, %v1145_v24  ;;  %v663_v48 = vsel %vm635_vm4, %v616_v36, 0.0  ;;  %v679_v22 = vsel %vm635_vm4, %v624_v15, 0.0 }
  0xf7   : > { %v656_v28 = vadd.f32 %v655_v25, %v654_v21  ;;  %v526_v29 = vpop.f32.mrf.mxu0  ;;  %v951_v21 = vpop.f32.mrf.mxu1  ;;  %v626_v25 = vmax.f32 %v572_v16, 0.0 }
  0xf8   : > { %v527_v32 = vadd.f32 %v1145_v24, %v526_v29  ;;  %v659_v37 = vsel %vm635_vm4, %v614_v27, 0.0  ;;  %v617_v41 = vmax.f32 %v535_v31, 0.0  ;;  %v681_v27 = vsel %vm635_vm4, %v625_v18, 0.0 }
  0xf9   : > { %v658_v33 = vadd.f32 %v657_v30, %v656_v28  ;;  %v938_v34 = vpop.f32.mrf.mxu0  ;;  %v583_v28 = vadd.f32 %v947_v47, %v1145_v24  ;;  %v627_v29 = vmax.f32 %v575_v43, 0.0  ;;  %v590_v31 = vpop.f32.mrf.mxu1 }
  0xfa   : > { %v615_v38 = vmax.f32 %v527_v32, 0.0  ;;  %v548_v49 = vadd.f32 %v938_v34, %v1145_v24  ;;  %v665_v53 = vsel %vm635_vm4, %v617_v41, 0.0  ;;  %v628_v32 = vmax.f32 %v580_v1, 0.0 }
  0xfb   : > { %v660_v39 = vadd.f32 %v659_v37, %v658_v33  ;;  %v539_v40 = vpop.f32.mrf.mxu0  ;;  %v683_v33 = vsel %vm635_vm4, %v626_v25, 0.0  ;;  %v588_v34 = vadd.f32 %v1145_v24, %v587_v14  ;;  %v629_v36 = vmax.f32 %v583_v28, 0.0 }
  0xfc   : > { %v661_v42 = vsel %vm635_vm4, %v615_v38, 0.0  ;;  %v540_v44 = vadd.f32 %v1145_v24, %v539_v40  ;;  %v620_v59 = vmax.f32 %v548_v49, 0.0  ;;  %v685_v37 = vsel %vm635_vm4, %v627_v29, 0.0 }
  0xfd   : > { %v662_v45 = vadd.f32 %v661_v42, %v660_v39  ;;  %v939_v46 = vpop.f32.mrf.mxu0  ;;  %v591_v23 = vadd.f32 %v1145_v24, %v590_v31  ;;  %v687_v39 = vsel %vm635_vm4, %v628_v32, 0.0  ;;  %v596_v40 = vadd.f32 %v950_v5, %v1145_v24  ;;  %v715_v5 = vld [vmem:[%s1243_s4] sm:$0x1] }
  0xfe   : > { %v618_v50 = vmax.f32 %v540_v44, 0.0  ;;  %v551_v55 = vadd.f32 %v939_v46, %v1145_v24  ;;  %v671_v6 = vsel %vm635_vm4, %v620_v59, 0.0  ;;  %v630_v41 = vmax.f32 %v588_v34, 0.0 }
  0xff   : > { %v664_v51 = vadd.f32 %v663_v48, %v662_v45  ;;  %v542_v52 = vpop.f32.mrf.mxu0  ;;  %v689_v44 = vsel %vm635_vm4, %v629_v36, 0.0  ;;  %v599_v45 = vadd.f32 %v951_v21, %v1145_v24  ;;  %v631_v46 = vmax.f32 %v591_v23, 0.0 }
 0x100   : > { %v543_v56 = vadd.f32 %v1145_v24, %v542_v52  ;;  %v667_v60 = vsel %vm635_vm4, %v618_v50, 0.0  ;;  %v621_v0 = vmax.f32 %v551_v55, 0.0  ;;  %v632_v48 = vmax.f32 %v596_v40, 0.0 }
 0x101   : > { %v666_v57 = vadd.f32 %v665_v53, %v664_v51  ;;  %v691_v49 = vsel %vm635_vm4, %v630_v41, 0.0  ;;  %v633_v51 = vmax.f32 %v599_v45, 0.0  ;;  %v693_v52 = vsel %vm635_vm4, %v631_v46, 0.0 }
 0x102   : > { %v619_v62 = vmax.f32 %v543_v56, 0.0  ;;  %v673_v10 = vsel %vm635_vm4, %v621_v0, 0.0  ;;  %v695_v55 = vsel %vm635_vm4, %v632_v48, 0.0  ;;  %v634_v0 = vld [vmem:[#allocation2] sm:$0x1] }
 0x103   : > { %v668_v63 = vadd.f32 %v667_v60, %v666_v57  ;;  %v697_v57 = vsel %vm635_vm4, %v633_v51, 0.0 }
 0x104   : > { %v669_v2 = vsel %vm635_vm4, %v619_v62, 0.0 }
 0x105   : > { %v670_v4 = vadd.f32 %v669_v2, %v668_v63 }
 0x107   : > { %v672_v9 = vadd.f32 %v671_v6, %v670_v4 }
 0x109   : > { %v674_v13 = vadd.f32 %v673_v10, %v672_v9 }
 0x10b   : > { %v676_v17 = vadd.f32 %v675_v12, %v674_v13 }
 0x10d   : > { %v678_v20 = vadd.f32 %v677_v19, %v676_v17 }
 0x10f   : > { %v680_v26 = vadd.f32 %v679_v22, %v678_v20 }
 0x111   : > { %v682_v30 = vadd.f32 %v681_v27, %v680_v26 }
 0x113   : > { %v684_v35 = vadd.f32 %v683_v33, %v682_v30 }
 0x115   : > { %v686_v38 = vadd.f32 %v685_v37, %v684_v35 }
 0x117   : > { %v688_v42 = vadd.f32 %v687_v39, %v686_v38 }
 0x119   : > { %v690_v47 = vadd.f32 %v689_v44, %v688_v42 }
 0x11b   : > { %v692_v50 = vadd.f32 %v691_v49, %v690_v47 }
 0x11d   : > { %v694_v53 = vadd.f32 %v693_v52, %v692_v50 }
 0x11f   : > { %v696_v56 = vadd.f32 %v695_v55, %v694_v53 }
 0x121   : > { %v698_v58 = vadd.f32 %v697_v57, %v696_v56 }
 0x123   : > { %v699_v59 = vrot.slane %v698_v58, 4 }
 0x125   : > { %v700_v24 = vadd.f32 %v699_v59, %v698_v58 }
 0x127   : > { %v701_v60 = vrot.slane %v700_v24, 2 }
 0x129   : > { %v702_v61 = vadd.f32 %v701_v60, %v700_v24 }
 0x12b   : > { %v703_v62 = vrot.slane %v702_v61, 1 }
 0x12d   : > { %v704_v63 = vadd.f32 %v703_v62, %v702_v61 }
 0x12f   : > { %v705_v2 = vmul.f32 0.00390625, %v704_v63 }
 0x131   : > { %v706_v3 = vadd.f32 %v705_v2, %v634_v0 }
 0x133   : > { %708 = vst.msk [vmem:[#allocation2] sm:$0x1] %vm247_vm2, %v706_v3 }
 0x13a   : > { %v712_v4 = vld [vmem:[#allocation2] sm:$0x1] }
 0x13b   : > { %957 = vmatmul.mubr.msk.f32.vlgmr.msra.gmra.mxu1 %vm635_vm4, %v712_v4 }
 0x1fb   : > { %v785_v6 = vpop.f32.mrf.mxu1 }
 0x1fc   : > { %v786_v7 = vadd.f32 %v785_v6, %v715_v5 }
 0x1fd   : > { %v958_v8 = vpop.f32.mrf.mxu1 }
 0x1fe   : > { %790 = vst.msk [vmem:[%s241_s22] sm:$0x1] %vm789_vm5, %v786_v7 }
 0x1ff PF: > { %s15_s20 = sadd.s32 1, %s1034_s20   ;;  %s1245_s18 = smov %s1030_s19 }
 0x200   : > { %p12_p6 = scmp.ge.s32.totalorder %s15_s20, 4   ;;  %s1246_s19 = smov %s1248_s21 }
 0x202   :  { %14 = sbr.rel (!%p12_p6) target bundleno = 2 (0x2), region = 78 }

</bundles_post_ra>
